<compile_context>
chip_gen: v5e
topology: v5e:2x2
jax: 0.10.0
libtpu: 0.0.40
codegen_flags: <defaults>
</compile_context>

<pallas_src>
import jax
import jax.numpy as jnp
from jax.experimental import pallas as pl
from jax.experimental.pallas import tpu as pltpu


_NEG_FILL = -1e30                     # class-padding filler (exp underflows to 0)
_LANES = 128
_MAX_TILE_ROWS = 2048                 # rows per batch tile (upper cap)
_TARGET_TILE_BYTES = 2 * 1024 * 1024  # per input buffer (pipeline double-buffers)


def _make_ce_kernel(tile_n: int, resident_target: bool):
    """Per-sample cross-entropy over one (tile_n, C_pad) tile of logits."""

    def kernel(tgt_ref, x_ref, out_ref):
        # Native-dtype load; single in-VMEM f32 upcast (mandatory on v5e
        # anyway: no bf16 VPU/EUP there).
        x = x_ref[...].astype(jnp.float32)                # (tile_n, C_pad)

        if resident_target:
            # Full (N_pad, 1) target column stays VMEM-resident for the whole
            # grid (constant index_map => DMA'd once); slice this tile's rows.
            start = pl.multiple_of(pl.program_id(0) * tile_n, tile_n)
            t = tgt_ref[pl.ds(start, tile_n), :]          # (tile_n, 1) int32
        else:
            t = tgt_ref[...]                              # (tile_n, 1) int32

        # Numerically stable log-sum-exp over the class (lane) axis.  Padded
        # classes hold _NEG_FILL, so exp() underflows to 0 and they drop out.
        m = jnp.max(x, axis=1, keepdims=True)             # (tile_n, 1)
        lse = m + jnp.log(jnp.sum(jnp.exp(x - m), axis=1, keepdims=True))

        # Gather the target-class logit via a one-hot (iota compare) mask.
        # NOTE: out-of-range targets silently give picked=0 (loss == lse);
        # there is no ignore_index support, unlike nn.CrossEntropyLoss.
        cls = jax.lax.broadcasted_iota(jnp.int32, x.shape, 1)
        picked = jnp.sum(jnp.where(cls == t, x, 0.0), axis=1, keepdims=True)

        out_ref[...] = lse - picked                       # (tile_n, 1) f32

    return kernel


def _choose_tile_n(n_rows: int, c_pad: int, itemsize: int) -> int:
    """Rows per batch tile: ~_TARGET_TILE_BYTES per input buffer, capped at
    _MAX_TILE_ROWS, a multiple of 8 sublanes, and small enough to keep >=2
    grid steps when the batch allows it (v7x megacore load balance).  These
    sizes stay well inside v7x's 64 MiB VMEM at the default scoped limit."""
    t = _TARGET_TILE_BYTES // max(1, c_pad * itemsize)
    t = max(8, min(_MAX_TILE_ROWS, t))
    t = min(t, max(8, ((n_rows + 15) // 16) * 8))   # prefer >=2 tiles
    return max(8, (t // 8) * 8)


def _per_sample_ce(logits, target, *, tile_n=None, resident_target=None):
    """logits: (N, C) float (any dtype); target: (N,) int -> (N,) f32 CE."""
    n, c = logits.shape

    # Pad the class axis to a multiple of 128 lanes (full lane utilization).
    c_pad = max(_LANES, ((c + _LANES - 1) // _LANES) * _LANES)
    if c_pad != c:
        logits = jnp.pad(logits, ((0, 0), (0, c_pad - c)),
                         constant_values=_NEG_FILL)

    if tile_n is None:
        tile_n = _choose_tile_n(n, c_pad, logits.dtype.itemsize)
    n_pad = pl.cdiv(n, tile_n) * tile_n
    if n_pad != n:                                   # tail rows are dropped below
        logits = jnp.pad(logits, ((0, n_pad - n), (0, 0)))

    tgt = target.astype(jnp.int32).reshape(n, 1)
    if n_pad != n:
        tgt = jnp.pad(tgt, ((0, n_pad - n), (0, 0)))

    if resident_target is None:
        # The (N_pad, 1) int32 column is lane-padded 128x in VMEM (~512 B/row);
        # keep it resident only while that footprint stays small.
        resident_target = n_pad * 512 <= (4 << 20)

    num_tiles = n_pad // tile_n
    if resident_target:
        tgt_spec = pl.BlockSpec((n_pad, 1), lambda i: (0, 0))
    else:
        tgt_spec = pl.BlockSpec((tile_n, 1), lambda i: (i, 0))

    out = pl.pallas_call(
        _make_ce_kernel(tile_n, resident_target),
        out_shape=jax.ShapeDtypeStruct((n_pad, 1), jnp.float32),
        grid_spec=pltpu.PrefetchScalarGridSpec(
            num_scalar_prefetch=0,
            grid=(num_tiles,),
            in_specs=[
                tgt_spec,
                # If profiling shows exposed DMA, add
                # `pipeline_mode=pl.Buffered(3)` here (v5e/v6e headroom only).
                pl.BlockSpec((tile_n, c_pad), lambda i: (i, 0)),
            ],
            out_specs=pl.BlockSpec((tile_n, 1), lambda i: (i, 0)),
        ),
        compiler_params=pltpu.CompilerParams(
            dimension_semantics=("parallel",)),
    )(tgt, logits)

    return out[:n, 0]                                # drop padded rows


def group_loss(logits_list, target, equalize_losses=False, **ce_kwargs):
    """Mirrors GroupLoss.forward with criterion=CrossEntropyLoss(reduction='none').

    Returns (loss_scalar, sorted_per_sample_losses_of_last_logit).
    """
    loss = jnp.float32(0.0)
    all_losses = None
    for logits in logits_list:       # G is tiny; no (G, N, C) stack copy in HBM
        all_losses = _per_sample_ce(logits, target, **ce_kwargs)
        if equalize_losses:
            # Faithful to the PyTorch in-place hack
            # `all_losses *= 1 / all_losses * all_losses.mean()`
            # (NaN/inf if a per-sample loss is exactly 0, same as the original).
            all_losses = all_losses * (1.0 / all_losses) * jnp.mean(all_losses)
        loss = loss + jnp.mean(all_losses)
    return loss, jnp.sort(all_losses, axis=0)


def _reference(logits_list, target, equalize_losses=False):
    """Pure-JAX reference for validation."""
    loss = jnp.float32(0.0)
    last = None
    for lg in logits_list:
        logp = jax.nn.log_softmax(lg.astype(jnp.float32), axis=1)
        per = -jnp.take_along_axis(
            logp, target.astype(jnp.int32)[:, None], axis=1)[:, 0]
        if equalize_losses:
            per = per * (1.0 / per) * jnp.mean(per)
        loss = loss + jnp.mean(per)
        last = per
    return loss, jnp.sort(last, axis=0)


if __name__ == "__main__":
    key = jax.random.PRNGKey(0)
    G = 3
    keys = jax.random.split(key, 2 * G + 2)

    def check(logits_list, target, equalize, **kw):
        loss, sorted_losses = group_loss(logits_list, target,
                                         equalize_losses=equalize, **kw)
        loss = jax.block_until_ready(loss)
        sorted_losses = jax.block_until_ready(sorted_losses)
        ref_loss, ref_sorted = _reference(logits_list, target,
                                          equalize_losses=equalize)
        assert jnp.allclose(loss, ref_loss, atol=1e-4, rtol=1e-4), \
            (loss, ref_loss)
        assert jnp.allclose(sorted_losses, ref_sorted, atol=1e-4, rtol=1e-4)

    # Case A: aligned layout (C multiple of 128), native bf16 logits.
    N, C = 256, 128
    logits_a = [jax.random.normal(keys[g], (N, C), dtype=jnp.bfloat16)
                for g in range(G)]
    target_a = jax.random.randint(keys[G], (N,), 0, C, dtype=jnp.int32)
    for equalize in (False, True):
        check(logits_a, target_a, equalize)

    # Case B: same data with forced small tiles, exercising the multi-tile
    # grid and both target paths (VMEM-resident vs per-tile blocks).
    check(logits_a, target_a, False, tile_n=64)
    check(logits_a, target_a, False, tile_n=64, resident_target=False)

    # Case C: unaligned shapes (class padding to 128, batch tail padding).
    N2, C2 = 37, 48
    logits_c = [jax.random.normal(keys[G + 1 + g], (N2, C2), dtype=jnp.float32)
                for g in range(G)]
    target_c = jax.random.randint(keys[2 * G + 1], (N2,), 0, C2,
                                  dtype=jnp.int32)
    for equalize in (False, True):
        check(logits_c, target_c, equalize)

    print("KERNEL_OK")
</pallas_src>

<mosaic_0001>
module attributes {stable_mosaic.version = 11 : i64} {
  func.func @kernel(%arg0: i32, %arg1: memref<256x1xi32, #tpu.memory_space<vmem>>, %arg2: memref<128x128xbf16, #tpu.memory_space<vmem>>, %arg3: memref<128x1xf32, #tpu.memory_space<vmem>>) attributes {dimension_semantics = [#tpu.dimension_semantics<parallel>], iteration_bounds = array<i64: 2>, scalar_prefetch = 0 : i64, scratch_operands = 0 : i64, tpu.core_type = #tpu.core_type<tc>, window_params = [{pipeline_mode = #tpu.pipeline_mode<synchronous>, transform_indices = @transform_0, window_bounds = array<i64: 256, 1>}, {transform_indices = @transform_1, window_bounds = array<i64: 128, 128>}, {transform_indices = @transform_2, window_bounds = array<i64: 128, 1>}]} {
    %c0 = arith.constant 0 : index
    %c0_0 = arith.constant 0 : index
    %0 = vector.load %arg2[%c0, %c0_0] : memref<128x128xbf16, #tpu.memory_space<vmem>>, vector<128x128xbf16>
    %1 = arith.extf %0 : vector<128x128xbf16> to vector<128x128xf32>
    %c128_i32 = arith.constant 128 : i32
    %2 = arith.muli %arg0, %c128_i32 : i32
    %3 = tpu.assume_multiple %2, 128 : i32
    %4 = arith.index_cast %3 : i32 to index
    %c0_1 = arith.constant 0 : index
    %5 = vector.load %arg1[%4, %c0_1] : memref<256x1xi32, #tpu.memory_space<vmem>>, vector<128x1xi32>
    %cst = arith.constant dense<0xFF800000> : vector<128xf32>
    %6 = vector.multi_reduction <maximumf>, %1, %cst [1] : vector<128x128xf32> to vector<128xf32>
    %7 = vector.shape_cast %6 : vector<128xf32> to vector<128x1xf32>
    %8 = vector.broadcast %7 : vector<128x1xf32> to vector<128x128xf32>
    %9 = arith.subf %1, %8 : vector<128x128xf32>
    %10 = math.exp %9 : vector<128x128xf32>
    %cst_2 = arith.constant dense<0.000000e+00> : vector<128xf32>
    %11 = vector.multi_reduction <add>, %10, %cst_2 [1] : vector<128x128xf32> to vector<128xf32>
    %12 = vector.shape_cast %11 : vector<128xf32> to vector<128x1xf32>
    %13 = math.log %12 : vector<128x1xf32>
    %14 = arith.addf %7, %13 : vector<128x1xf32>
    %15 = tpu.iota {dimensions = array<i32: 1>} : vector<128x128xi32>
    %16 = vector.broadcast %5 : vector<128x1xi32> to vector<128x128xi32>
    %17 = arith.cmpi eq, %15, %16 : vector<128x128xi32>
    %cst_3 = arith.constant 0.000000e+00 : f32
    %18 = vector.broadcast %cst_3 : f32 to vector<128x128xf32>
    %19 = arith.select %17, %1, %18 : vector<128x128xi1>, vector<128x128xf32>
    %cst_4 = arith.constant dense<0.000000e+00> : vector<128xf32>
    %20 = vector.multi_reduction <add>, %19, %cst_4 [1] : vector<128x128xf32> to vector<128xf32>
    %21 = vector.shape_cast %20 : vector<128xf32> to vector<128x1xf32>
    %22 = arith.subf %14, %21 : vector<128x1xf32>
    %c0_5 = arith.constant 0 : index
    %c0_6 = arith.constant 0 : index
    %23 = vector.load %arg3[%c0_5, %c0_6] : memref<128x1xf32, #tpu.memory_space<vmem>>, vector<128x1xf32>
    tpu.vector_store %arg3[%c0_5, %c0_6], %22 {strides = array<i32>} : memref<128x1xf32, #tpu.memory_space<vmem>>, vector<128x1xf32>,
    return
  }
  func.func @transform_0(%arg0: i32) -> (i32, i32) {
    %c0_i32 = arith.constant 0 : i32
    %c0_i32_0 = arith.constant 0 : i32
    %c0_i32_1 = arith.constant 0 : i32
    return %c0_i32, %c0_i32_0 : i32, i32
  }
  func.func @transform_1(%arg0: i32) -> (i32, i32) {
    %c0_i32 = arith.constant 0 : i32
    %c0_i32_0 = arith.constant 0 : i32
    return %arg0, %c0_i32 : i32, i32
  }
  func.func @transform_2(%arg0: i32) -> (i32, i32) {
    %c0_i32 = arith.constant 0 : i32
    %c0_i32_0 = arith.constant 0 : i32
    return %arg0, %c0_i32 : i32, i32
  }
}

</mosaic_0001>

<bundles_post_ra>
// kernel: tpu_custom_call.1
= control target key start
LH: loop header
LB: loop body
LE: loop exit
PB: predicated region body
PF: predicated region fallthrough
CT: control target
= control target key end

     0   :  { %s713_s9 = smov 0   ;;  %s995_s0 = inlined_call_operand.vmem [shape: s32[256,1], index: 0, kind: input, shape index: {}]   ;;  %s996_s1 = inlined_call_operand.vmem [shape: bf16[256,128], index: 1, kind: input, shape index: {}]   ;;  %s997_s2 = inlined_call_operand.vmem [shape: f32[256,1], index: 2, kind: output, shape index: {}]  }
   0x1 LB: > { %s562_s10 = sadd.s32 4294967295, %s695_s9   ;;  %p566_p0 = scmp.ge.s32.totalorder %s695_s9, 1  ;;  %s695_s9 = sphi %s713_s9, %s12_s9  }
   0x2   : > { %p113_p1 = scmp.lt.s32.totalorder %s695_s9, 3 }
   0x4   : > { %p114_p2 = pnand %p566_p0, %p113_p1 }
   0x5   : > { %s567_s11 = sshll.u32 (!%p114_p2), %s562_s10, 4  ;;  %s571_s16 = sshll.u32 (!%p114_p2), %s562_s10, 7 }
   0x6   : > { %117 = sbr.rel (%p114_p2) target bundleno = 432 (0x1b0), region = 28  ;;  %p136_p3 = scmp.lt.s32.totalorder (!%p114_p2), %s567_s11, 31 }
   0x7   : > { %s792_s19 = scalar_lea.vmem (!%p114_p2), %s995_s0, %s571_s16 }
   0xb   : > { %s999_s11 = smov (!%p136_p3, %s567_s11), 31  ;;  %v697_v11 = vmov 0   ;;  %v181_v25 = vld [vmem:[%s792_s19] sm:$0xff]  ;;  %v183_v26 = vld [vmem:[%s792_s19 + $0x10] sm:$0xff]  ;;  %v182_v27 = vld [vmem:[%s792_s19 + $0x8] sm:$0xff]  ;;  %vm487_vm15 = vcmask 7168  }
   0xc   : > { %s568_s12 = sshll.u32 %s999_s11, 2  ;;  %622 = vset.pattern.permute.xlu2 %v697_v11  ;;  %624 = vset.pattern.permute.xlu1 %v697_v11  ;;  %v184_v28 = vld [vmem:[%s792_s19 + $0x18] sm:$0xff]  ;;  %v186_v29 = vld [vmem:[%s792_s19 + $0x28] sm:$0xff]  ;;  %v189_v30 = vld [vmem:[%s792_s19 + $0x40] sm:$0xff]  ;;  %s570_s20 = sshll.u32 %s999_s11, 3 }
   0xd   : > { %s729_s15 = scalar_lea.vmem %s996_s1, %s568_s12  ;;  %623 = vset.pattern.permute.xlu0 %v697_v11  ;;  %v185_v31 = vld [vmem:[%s792_s19 + $0x20] sm:$0xff]  ;;  %v188_v32 = vld [vmem:[%s792_s19 + $0x38] sm:$0xff]  ;;  %v187_v34 = vld [vmem:[%s792_s19 + $0x30] sm:$0xff]  ;;  %s930_s23 = scalar_lea.vmem %s997_s2, %s570_s20 }
   0xe   : > { %v607_v0 = vld [vmem:[%s729_s15 + $0x10] sm:$0xff]   ;;  %v606_v1 = vld [vmem:[%s729_s15 + $0x8] sm:$0xff]   ;;  %v575_v2 = vld [vmem:[%s729_s15] sm:$0xff]  }
   0xf   : > { %v734_v3 = vunpack.c.l.bf16 %v607_v0  ;;  %v736_v4 = vunpack.c.l.bf16 %v606_v1  ;;  %v738_v5 = vunpack.c.l.bf16 %v575_v2  ;;  %v743_v6 = vunpack.c.h.bf16 %v607_v0  ;;  %v609_v9 = vld [vmem:[%s729_s15 + $0x20] sm:$0xff]   ;;  %v608_v10 = vld [vmem:[%s729_s15 + $0x18] sm:$0xff]   ;;  %v610_v15 = vld [vmem:[%s729_s15 + $0x28] sm:$0xff]  }
  0x10   : > { %v745_v7 = vunpack.c.h.bf16 %v606_v1  ;;  %v747_v8 = vunpack.c.h.bf16 %v575_v2  ;;  %v754_v12 = vunpack.c.l.bf16 %v609_v9  ;;  %v756_v13 = vunpack.c.h.bf16 %v608_v10  ;;  %v612_v19 = vld [vmem:[%s729_s15 + $0x38] sm:$0xff]   ;;  %v611_v20 = vld [vmem:[%s729_s15 + $0x30] sm:$0xff]   ;;  %v190_v36 = vld [vmem:[%s792_s19 + $0x48] sm:$0xff] }
  0x11   : > { %205 = vmax.xlane.f32.xlu2 %v734_v3  ;;  %201 = vmax.xlane.f32.xlu1 %v736_v4  ;;  %v758_v14 = vunpack.c.l.bf16 %v608_v10  ;;  %v764_v16 = vunpack.c.h.bf16 %v610_v15  ;;  %v766_v17 = vunpack.c.l.bf16 %v610_v15  ;;  %v768_v18 = vunpack.c.h.bf16 %v609_v9  ;;  %v192_v33 = vld [vmem:[%s792_s19 + $0x58] sm:$0xff]  ;;  %v191_v35 = vld [vmem:[%s792_s19 + $0x50] sm:$0xff]  ;;  %v194_v37 = vld [vmem:[%s792_s19 + $0x68] sm:$0xff] }
  0x12   : > { %197 = vmax.xlane.f32.xlu0 %v738_v5  ;;  %v775_v21 = vunpack.c.l.bf16 %v612_v19  ;;  %v777_v22 = vunpack.c.h.bf16 %v611_v20  ;;  %v779_v23 = vunpack.c.l.bf16 %v611_v20  ;;  %v784_v24 = vunpack.c.h.bf16 %v612_v19  ;;  %v193_v38 = vld [vmem:[%s792_s19 + $0x60] sm:$0xff] }
  0x19   : > { %207 = vmax.xlane.f32.xlu2 %v743_v6  ;;  %203 = vmax.xlane.f32.xlu1 %v745_v7 }
  0x1a   : > { %199 = vmax.xlane.f32.xlu0 %v747_v8 }
  0x21   : > { %213 = vmax.xlane.f32.xlu2 %v754_v12  ;;  %211 = vmax.xlane.f32.xlu1 %v756_v13 }
  0x22   : > { %209 = vmax.xlane.f32.xlu0 %v758_v14 }
  0x29   : > { %219 = vmax.xlane.f32.xlu2 %v764_v16  ;;  %217 = vmax.xlane.f32.xlu1 %v766_v17 }
  0x2a   : > { %215 = vmax.xlane.f32.xlu0 %v768_v18 }
  0x31   : > { %225 = vmax.xlane.f32.xlu2 %v775_v21  ;;  %223 = vmax.xlane.f32.xlu1 %v777_v22 }
  0x32   : > { %221 = vmax.xlane.f32.xlu0 %v779_v23 }
  0x3a   : > { %227 = vmax.xlane.f32.xlu0 %v784_v24 }
  0x49   : > { %360 = vperm.xlu2 %622, %v181_v25  }
  0x4a   : > { %366 = vperm.xlu1 %624, %v183_v26  }
  0x4e   : > { %363 = vperm.xlu0 %623, %v182_v27  }
  0x51   : > { %369 = vperm.xlu2 %622, %v184_v28  }
  0x52   : > { %375 = vperm.xlu1 %624, %v186_v29  }
  0x56   : > { %384 = vperm.xlu0 %623, %v189_v30  }
  0x59   : > { %372 = vperm.xlu2 %622, %v185_v31  }
  0x5a   : > { %381 = vperm.xlu1 %624, %v188_v32  }
  0x5e   : > { %393 = vperm.xlu0 %623, %v192_v33  }
  0x61   : > { %378 = vperm.xlu2 %622, %v187_v34  }
  0x62   : > { %390 = vperm.xlu1 %624, %v191_v35  }
  0x69   : > { %387 = vperm.xlu2 %622, %v190_v36  }
  0x6a   : > { %399 = vperm.xlu1 %624, %v194_v37  }
  0x71   : > { %396 = vperm.xlu2 %622, %v193_v38  }
  0x84   : > { %v808_v39 = vpop.xlane.xlu2 %205  ;;  %v810_v40 = vpop.xlane.xlu1 %201 }
  0x85   : > { %v231_v41 = vsub.f32 %v736_v4, %v810_v40  ;;  %v814_v42 = vpop.xlane.xlu0 %197  ;;  %v233_v57 = vsub.f32 %v734_v3, %v808_v39 }
  0x86   : > { %v229_v43 = vsub.f32 %v738_v5, %v814_v42 }
  0x87   : > { %v249_v44 = vmul.f32 1.442695, %v231_v41  ;;  %v253_v62 = vmul.f32 1.442695, %v233_v57 }
  0x88   : > { %v245_v45 = vmul.f32 1.442695, %v229_v43 }
  0x89   : > { %625 = vpow2.f32 %v249_v44 }
  0x8a   : > { %627 = vpow2.f32 %v245_v45 }
  0x8c   : > { %v818_v46 = vpop.xlane.xlu2 %207  ;;  %v820_v47 = vpop.xlane.xlu1 %203 }
  0x8d   : > { %v234_v48 = vsub.f32 %v743_v6, %v818_v46  ;;  %v824_v49 = vpop.xlane.xlu0 %199  ;;  %v232_v50 = vsub.f32 %v745_v7, %v820_v47 }
  0x8e   : > { %v230_v51 = vsub.f32 %v747_v8, %v824_v49 }
  0x8f   : > { %v255_v52 = vmul.f32 1.442695, %v234_v48  ;;  %v251_v53 = vmul.f32 1.442695, %v232_v50  ;;  %v626_v54 = vpop.eup %625 }
  0x90   : > { %v247_v55 = vmul.f32 1.442695, %v230_v51  ;;  %v628_v56 = vpop.eup %627  ;;  %281 = vadd.xlane.f32.xlu0 %v626_v54 }
  0x91   : > { %629 = vpow2.f32 %v255_v52 }
  0x92   : > { %631 = vpow2.f32 %v247_v55 }
  0x93   : > { %633 = vpow2.f32 %v251_v53 }
  0x94   : > { %v832_v58 = vpop.xlane.xlu2 %213  ;;  %277 = vadd.xlane.f32.xlu1 %v628_v56  ;;  %v834_v59 = vpop.xlane.xlu1 %211 }
  0x95   : > { %v237_v60 = vsub.f32 %v754_v12, %v832_v58  ;;  %v838_v61 = vpop.xlane.xlu0 %209  ;;  %v236_v10 = vsub.f32 %v756_v13, %v834_v59 }
  0x96   : > { %v235_v63 = vsub.f32 %v758_v14, %v838_v61 }
  0x97   : > { %v630_v0 = vpop.eup %629  ;;  %v261_v1 = vmul.f32 1.442695, %v237_v60  ;;  %v259_v19 = vmul.f32 1.442695, %v236_v10 }
  0x98   : > { %v632_v2 = vpop.eup %631  ;;  %v257_v9 = vmul.f32 1.442695, %v235_v63  ;;  %287 = vadd.xlane.f32.xlu0 %v630_v0 }
  0x99   : > { %v634_v11 = vpop.eup %633  ;;  %635 = vpow2.f32 %v261_v1  ;;  %v357_v1 = vlaneseq }
  0x9a   : > { %637 = vpow2.f32 %v253_v62  ;;  %279 = vadd.xlane.f32.xlu2 %v632_v2 }
  0x9b   : > { %639 = vpow2.f32 %v257_v9  ;;  %v872_v9 = vand.u32 127, %v357_v1 }
  0x9c   : > { %v844_v15 = vpop.xlane.xlu2 %219  ;;  %283 = vadd.xlane.f32.xlu1 %v634_v11  ;;  %v846_v20 = vpop.xlane.xlu1 %217  ;;  %641 = vpow2.f32 %v259_v19  ;;  %v195_v11 = vld [vmem:[%s792_s19 + $0x70] sm:$0xff] }
  0x9d   : > { %v240_v25 = vsub.f32 %v764_v16, %v844_v15  ;;  %v850_v26 = vpop.xlane.xlu0 %215  ;;  %v239_v32 = vsub.f32 %v766_v17, %v846_v20 }
  0x9e   : > { %v238_v27 = vsub.f32 %v768_v18, %v850_v26 }
  0x9f   : > { %v636_v28 = vpop.eup %635  ;;  %v267_v29 = vmul.f32 1.442695, %v240_v25  ;;  %v265_v35 = vmul.f32 1.442695, %v239_v32 }
  0xa0   : > { %v638_v30 = vpop.eup %637  ;;  %v263_v31 = vmul.f32 1.442695, %v238_v27  ;;  %293 = vadd.xlane.f32.xlu0 %v636_v28  ;;  %v196_v28 = vld [vmem:[%s792_s19 + $0x78] sm:$0xff] }
  0xa1   : > { %v640_v33 = vpop.eup %639  ;;  %643 = vpow2.f32 %v267_v29 }
  0xa2   : > { %285 = vadd.xlane.f32.xlu2 %v638_v30  ;;  %645 = vpow2.f32 %v263_v31  ;;  %v642_v38 = vpop.eup %641 }
  0xa3   : > { %647 = vpow2.f32 %v265_v35 }
  0xa4   : > { %v856_v34 = vpop.xlane.xlu2 %225  ;;  %289 = vadd.xlane.f32.xlu1 %v640_v33  ;;  %v864_v43 = vpop.xlane.xlu1 %223 }
  0xa5   : > { %v243_v36 = vsub.f32 %v775_v21, %v856_v34  ;;  %v860_v37 = vpop.xlane.xlu0 %221  ;;  %v242_v51 = vsub.f32 %v777_v22, %v864_v43 }
  0xa6   : > { %v241_v41 = vsub.f32 %v779_v23, %v860_v37 }
  0xa7   : > { %v644_v44 = vpop.eup %643  ;;  %v273_v45 = vmul.f32 1.442695, %v243_v36  ;;  %v271_v53 = vmul.f32 1.442695, %v242_v51 }
  0xa8   : > { %v269_v48 = vmul.f32 1.442695, %v241_v41  ;;  %v646_v50 = vpop.eup %645  ;;  %299 = vadd.xlane.f32.xlu0 %v644_v44 }
  0xa9   : > { %649 = vpow2.f32 %v273_v45  ;;  %v648_v55 = vpop.eup %647 }
  0xaa   : > { %291 = vadd.xlane.f32.xlu2 %v642_v38  ;;  %651 = vpow2.f32 %v269_v48 }
  0xab   : > { %653 = vpow2.f32 %v271_v53 }
  0xac   : > { %v361_v52 = vpop.permute.xlu2 %360  ;;  %295 = vadd.xlane.f32.xlu1 %v646_v50 }
  0xad   : > { %v868_v54 = vpop.xlane.xlu0 %227  ;;  %vm407_vm0 = vcmp.eq.s32.totalorder %v872_v9, %v361_v52 }
  0xae   : > { %v244_v56 = vsub.f32 %v784_v24, %v868_v54  ;;  %v423_v19 = vsel %vm407_vm0, %v738_v5, 0.0 }
  0xaf   : > { %v650_v57 = vpop.eup %649 }
  0xb0   : > { %v275_v60 = vmul.f32 1.442695, %v244_v56  ;;  %v652_v62 = vpop.eup %651  ;;  %305 = vadd.xlane.f32.xlu0 %v650_v57 }
  0xb1   : > { %v654_v0 = vpop.eup %653 }
  0xb2   : > { %297 = vadd.xlane.f32.xlu2 %v648_v55  ;;  %655 = vpow2.f32 %v275_v60 }
  0xb4   : > { %301 = vadd.xlane.f32.xlu1 %v652_v62  ;;  %v370_v63 = vpop.permute.xlu2 %369 }
  0xb5   : > { %vm410_vm1 = vcmp.eq.s32.totalorder %v872_v9, %v370_v63 }
  0xb6   : > { %v426_v27 = vsel %vm410_vm1, %v745_v7, 0.0 }
  0xb8   : > { %v656_v2 = vpop.eup %655 }
  0xba   : > { %303 = vadd.xlane.f32.xlu2 %v654_v0 }
  0xbc   : > { %307 = vadd.xlane.f32.xlu1 %v656_v2  ;;  %v373_v10 = vpop.permute.xlu2 %372  ;;  %v367_v31 = vpop.permute.xlu1 %366 }
  0xbd   : > { %vm409_vm7 = vcmp.eq.s32.totalorder %v872_v9, %v367_v31  ;;  %vm411_vm9 = vcmp.eq.s32.totalorder %v872_v9, %v373_v10 }
  0xbe   : > { %v425_v44 = vsel %vm409_vm7, %v736_v4, 0.0  ;;  %v427_v48 = vsel %vm411_vm9, %v734_v3, 0.0 }
  0xc0   : > { %v364_v36 = vpop.permute.xlu0 %363 }
  0xc1   : > { %vm408_vm5 = vcmp.eq.s32.totalorder %v872_v9, %v364_v36 }
  0xc4   : > { %439 = vadd.xlane.f32.xlu1 %v423_v19  ;;  %402 = vperm.xlu0 %623, %v195_v11   ;;  %v379_v25 = vpop.permute.xlu2 %378  ;;  %v376_v33 = vpop.permute.xlu1 %375 }
  0xc5   : > { %vm413_vm2 = vcmp.eq.s32.totalorder %v872_v9, %v379_v25  ;;  %vm412_vm6 = vcmp.eq.s32.totalorder %v872_v9, %v376_v33 }
  0xc6   : > { %v429_v30 = vsel %vm413_vm2, %v758_v14, 0.0  ;;  %v424_v14 = vsel %vm408_vm5, %v747_v8, 0.0 }
  0xc8   : > { %v385_v41 = vpop.permute.xlu0 %384 }
  0xc9   : > { %vm415_vm8 = vcmp.eq.s32.totalorder %v872_v9, %v385_v41 }
  0xca   : > { %v431_v45 = vsel %vm415_vm8, %v754_v12, 0.0 }
  0xcc   : > { %445 = vadd.xlane.f32.xlu1 %v426_v27  ;;  %v388_v29 = vpop.permute.xlu2 %387  ;;  %v382_v35 = vpop.permute.xlu1 %381 }
  0xcd   : > { %vm416_vm3 = vcmp.eq.s32.totalorder %v872_v9, %v388_v29  ;;  %vm414_vm11 = vcmp.eq.s32.totalorder %v872_v9, %v382_v35 }
  0xce   : > { %v432_v5 = vsel %vm416_vm3, %v768_v18, 0.0  ;;  %v428_v18 = vsel %vm412_vm6, %v743_v6, 0.0  ;;  %v430_v51 = vsel %vm414_vm11, %v756_v13, 0.0 }
  0xd0   : > { %v394_v8 = vpop.permute.xlu0 %393 }
  0xd1   : > { %vm418_vm10 = vcmp.eq.s32.totalorder %v872_v9, %v394_v8 }
  0xd2   : > { %405 = vperm.xlu2 %622, %v196_v28   ;;  %v434_v6 = vsel %vm418_vm10, %v764_v16, 0.0 }
  0xd4   : > { %451 = vadd.xlane.f32.xlu1 %v429_v30  ;;  %v397_v32 = vpop.permute.xlu2 %396  ;;  %v391_v38 = vpop.permute.xlu1 %390 }
  0xd5   : > { %vm419_vm4 = vcmp.eq.s32.totalorder %v872_v9, %v397_v32  ;;  %vm417_vm12 = vcmp.eq.s32.totalorder %v872_v9, %v391_v38 }
  0xd6   : > { %v435_v7 = vsel %vm419_vm4, %v779_v23, 0.0  ;;  %v433_v3 = vsel %vm417_vm12, %v766_v17, 0.0 }
  0xdc   : > { %457 = vadd.xlane.f32.xlu1 %v432_v5  ;;  %v400_v23 = vpop.permute.xlu1 %399 }
  0xdd   : > { %vm420_vm13 = vcmp.eq.s32.totalorder %v872_v9, %v400_v23 }
  0xde   : > { %v436_v56 = vsel %vm420_vm13, %v777_v22, 0.0 }
  0xe4   : > { %463 = vadd.xlane.f32.xlu1 %v435_v7 }
  0xee   : > { %441 = vadd.xlane.f32.xlu0 %v424_v14 }
  0xf6   : > { %449 = vadd.xlane.f32.xlu0 %v428_v18 }
  0xfb   : > { %443 = vadd.xlane.f32.xlu2 %v425_v44 }
  0xfe   : > { %455 = vadd.xlane.f32.xlu0 %v431_v45 }
 0x103   : > { %447 = vadd.xlane.f32.xlu2 %v427_v48  ;;  %v899_v4 = vpop.xlane.xlu0 %281 }
 0x106   : > { %461 = vadd.xlane.f32.xlu0 %v434_v6 }
 0x107   : > { %v278_v50 = vpop.xlane.xlu1 %277 }
 0x108   : > { %657 = vlog2.f32 %v278_v50 }
 0x10b   : > { %453 = vadd.xlane.f32.xlu2 %v430_v51  ;;  %v903_v53 = vpop.xlane.xlu0 %287 }
 0x10d   : > { %v280_v12 = vpop.xlane.xlu2 %279 }
 0x10e   : > { %v658_v1 = vpop.eup %657 }
 0x10f   : > { %v284_v52 = vpop.xlane.xlu1 %283  ;;  %v310_v22 = vmul.f32 0.6931472, %v658_v1 }
 0x110   : > { %659 = vlog2.f32 %v284_v52 }
 0x111   : > { %v341_v19 = vadd.f32 %v310_v22, %v814_v42 }
 0x113   : > { %459 = vadd.xlane.f32.xlu2 %v433_v3  ;;  %v910_v57 = vpop.xlane.xlu0 %293 }
 0x115   : > { %v906_v55 = vpop.xlane.xlu2 %285 }
 0x116   : > { %v660_v25 = vpop.eup %659 }
 0x117   : > { %v290_v16 = vpop.xlane.xlu1 %289  ;;  %v316_v31 = vmul.f32 0.6931472, %v660_v25 }
 0x118   : > { %661 = vlog2.f32 %v290_v16 }
 0x119   : > { %v344_v5 = vadd.f32 %v316_v31, %v820_v47 }
 0x11b   : > { %465 = vadd.xlane.f32.xlu2 %v436_v56  ;;  %v914_v62 = vpop.xlane.xlu0 %299 }
 0x11d   : > { %v912_v13 = vpop.xlane.xlu2 %291 }
 0x11e   : > { %v662_v32 = vpop.eup %661 }
 0x11f   : > { %v296_v60 = vpop.xlane.xlu1 %295 }
 0x120   : > { %663 = vlog2.f32 %v296_v60 }
 0x123   : > { %v920_v2 = vpop.xlane.xlu0 %305 }
 0x125   : > { %v916_v63 = vpop.xlane.xlu2 %297 }
 0x126   : > { %v664_v35 = vpop.eup %663 }
 0x127   : > { %v302_v17 = vpop.xlane.xlu1 %301  ;;  %v328_v14 = vmul.f32 0.6931472, %v664_v35 }
 0x128   : > { %665 = vlog2.f32 %v302_v17 }
 0x129   : > { %v350_v47 = vadd.f32 %v328_v14, %v850_v26  ;;  %667 = vlog2.f32 %v280_v12 }
 0x12a   : > { %669 = vlog2.f32 %v903_v53 }
 0x12b   : > { %671 = vlog2.f32 %v899_v4 }
 0x12c   : > { %673 = vlog2.f32 %v910_v57 }
 0x12d   : > { %v918_v0 = vpop.xlane.xlu2 %303  ;;  %675 = vlog2.f32 %v906_v55 }
 0x12e   : > { %v666_v38 = vpop.eup %665  ;;  %677 = vlog2.f32 %v914_v62 }
 0x12f   : > { %v922_v10 = vpop.xlane.xlu1 %307  ;;  %v334_v44 = vmul.f32 0.6931472, %v666_v38  ;;  %v668_v8 = vpop.eup %667  ;;  %679 = vlog2.f32 %v912_v13 }
 0x130   : > { %v312_v48 = vmul.f32 0.6931472, %v668_v8  ;;  %v670_v6 = vpop.eup %669  ;;  %681 = vlog2.f32 %v916_v63 }
 0x131   : > { %v320_v12 = vmul.f32 0.6931472, %v670_v6  ;;  %683 = vlog2.f32 %v918_v0 }
 0x132   : > { %v342_v26 = vadd.f32 %v312_v48, %v824_v49  ;;  %685 = vlog2.f32 %v922_v10 }
 0x133   : > { %v346_v53 = vadd.f32 %v320_v12, %v818_v46  ;;  %687 = vlog2.f32 %v920_v2 }
 0x135   : > { %v406_v11 = vpop.permute.xlu2 %405 }
 0x136   : > { %vm422_vm14 = vcmp.eq.s32.totalorder %v872_v9, %v406_v11  ;;  %v403_v27 = vpop.permute.xlu0 %402 }
 0x137   : > { %v440_v28 = vpop.xlane.xlu1 %439  ;;  %v438_v29 = vsel %vm422_vm14, %v784_v24, 0.0  ;;  %vm421_vm0 = vcmp.eq.s32.totalorder %v872_v9, %v403_v27  ;;  %v322_v24 = vmul.f32 0.6931472, %v662_v32 }
 0x138   : > { %v471_v30 = vsub.f32 %v341_v19, %v440_v28  ;;  %469 = vadd.xlane.f32.xlu1 %v438_v29  ;;  %v437_v42 = vsel %vm421_vm0, %v775_v21, 0.0 }
 0x139   : > { %467 = vadd.xlane.f32.xlu0 %v437_v42  ;;  %v347_v9 = vadd.f32 %v322_v24, %v838_v61  ;;  %v353_v61 = vadd.f32 %v334_v44, %v860_v37  ;;  %v672_v37 = vpop.eup %671 }
 0x13a   : > { %488 = vst.msk [vmem:[%s930_s23] sm:$0xff] %vm487_vm15, %v471_v30  ;;  %v314_v52 = vmul.f32 0.6931472, %v672_v37  ;;  %v674_v3 = vpop.eup %673 }
 0x13b   : > { %v326_v49 = vmul.f32 0.6931472, %v674_v3  ;;  %v676_v57 = vpop.eup %675 }
 0x13c   : > { %v343_v56 = vadd.f32 %v314_v52, %v810_v40  ;;  %v318_v55 = vmul.f32 0.6931472, %v676_v57  ;;  %v678_v1 = vpop.eup %677 }
 0x13d   : > { %v349_v46 = vadd.f32 %v326_v49, %v832_v58  ;;  %v332_v11 = vmul.f32 0.6931472, %v678_v1  ;;  %v680_v19 = vpop.eup %679 }
 0x13e   : > { %v345_v40 = vadd.f32 %v318_v55, %v808_v39  ;;  %v324_v13 = vmul.f32 0.6931472, %v680_v19  ;;  %v682_v39 = vpop.eup %681 }
 0x13f   : > { %v446_v33 = vpop.xlane.xlu1 %445  ;;  %v352_v58 = vadd.f32 %v332_v11, %v844_v15  ;;  %v684_v32 = vpop.eup %683 }
 0x140   : > { %v474_v7 = vsub.f32 %v344_v5, %v446_v33  ;;  %v348_v30 = vadd.f32 %v324_v13, %v834_v59  ;;  %v330_v5 = vmul.f32 0.6931472, %v682_v39  ;;  %v686_v0 = vpop.eup %685 }
 0x141   : > { %v340_v35 = vmul.f32 0.6931472, %v686_v0 }
 0x142   : > { %491 = vst.msk [vmem:[%s930_s23 + $0x18] sm:$0xff] %vm487_vm15, %v474_v7  ;;  %v351_v63 = vadd.f32 %v330_v5, %v846_v20  ;;  %v336_v7 = vmul.f32 0.6931472, %v684_v32  ;;  %v688_v20 = vpop.eup %687 }
 0x144   : > { %v354_v59 = vadd.f32 %v336_v7, %v864_v43 }
 0x147   : > { %v452_v36 = vpop.xlane.xlu1 %451 }
 0x148   : > { %v477_v21 = vsub.f32 %v347_v9, %v452_v36  ;;  %v338_v36 = vmul.f32 0.6931472, %v688_v20 }
 0x14a   : > { %494 = vst.msk [vmem:[%s930_s23 + $0x30] sm:$0xff] %vm487_vm15, %v477_v21  ;;  %v356_v21 = vadd.f32 %v340_v35, %v868_v54  ;;  %v355_v38 = vadd.f32 %v338_v36, %v856_v34 }
 0x14f   : > { %v458_v18 = vpop.xlane.xlu1 %457 }
 0x150   : > { %v480_v41 = vsub.f32 %v350_v47, %v458_v18 }
 0x152   : > { %497 = vst.msk [vmem:[%s930_s23 + $0x48] sm:$0xff] %vm487_vm15, %v480_v41 }
 0x157   : > { %v464_v23 = vpop.xlane.xlu1 %463 }
 0x158   : > { %v483_v45 = vsub.f32 %v353_v61, %v464_v23 }
 0x15a   : > { %500 = vst.msk [vmem:[%s930_s23 + $0x60] sm:$0xff] %vm487_vm15, %v483_v45 }
 0x161   : > { %v442_v50 = vpop.xlane.xlu0 %441 }
 0x162   : > { %v472_v51 = vsub.f32 %v342_v26, %v442_v50 }
 0x164   : > { %489 = vst.msk [vmem:[%s930_s23 + $0x8] sm:$0xff] %vm487_vm15, %v472_v51 }
 0x169   : > { %v450_v4 = vpop.xlane.xlu0 %449 }
 0x16a   : > { %v476_v16 = vsub.f32 %v346_v53, %v450_v4 }
 0x16c   : > { %493 = vst.msk [vmem:[%s930_s23 + $0x28] sm:$0xff] %vm487_vm15, %v476_v16 }
 0x16e   : > { %v444_v60 = vpop.xlane.xlu2 %443 }
 0x16f   : > { %v473_v17 = vsub.f32 %v343_v56, %v444_v60 }
 0x171   : > { %490 = vst.msk [vmem:[%s930_s23 + $0x10] sm:$0xff] %vm487_vm15, %v473_v17  ;;  %v456_v22 = vpop.xlane.xlu0 %455 }
 0x172   : > { %v479_v62 = vsub.f32 %v349_v46, %v456_v22 }
 0x174   : > { %496 = vst.msk [vmem:[%s930_s23 + $0x40] sm:$0xff] %vm487_vm15, %v479_v62 }
 0x176   : > { %v448_v25 = vpop.xlane.xlu2 %447 }
 0x177   : > { %v475_v27 = vsub.f32 %v345_v40, %v448_v25 }
 0x179   : > { %492 = vst.msk [vmem:[%s930_s23 + $0x20] sm:$0xff] %vm487_vm15, %v475_v27  ;;  %v462_v28 = vpop.xlane.xlu0 %461 }
 0x17a   : > { %v482_v29 = vsub.f32 %v352_v58, %v462_v28 }
 0x17c   : > { %499 = vst.msk [vmem:[%s930_s23 + $0x58] sm:$0xff] %vm487_vm15, %v482_v29 }
 0x17e   : > { %v454_v42 = vpop.xlane.xlu2 %453 }
 0x17f   : > { %v478_v31 = vsub.f32 %v348_v30, %v454_v42 }
 0x181   : > { %495 = vst.msk [vmem:[%s930_s23 + $0x38] sm:$0xff] %vm487_vm15, %v478_v31 }
 0x186   : > { %v460_v15 = vpop.xlane.xlu2 %459 }
 0x187   : > { %v481_v33 = vsub.f32 %v351_v63, %v460_v15 }
 0x189   : > { %498 = vst.msk [vmem:[%s930_s23 + $0x50] sm:$0xff] %vm487_vm15, %v481_v33 }
 0x18e   : > { %v466_v24 = vpop.xlane.xlu2 %465 }
 0x18f   : > { %v484_v9 = vsub.f32 %v354_v59, %v466_v24 }
 0x191   : > { %501 = vst.msk [vmem:[%s930_s23 + $0x68] sm:$0xff] %vm487_vm15, %v484_v9 }
 0x1ab   : > { %v470_v14 = vpop.xlane.xlu1 %469 }
 0x1ac   : > { %v486_v47 = vsub.f32 %v356_v21, %v470_v14  ;;  %v468_v43 = vpop.xlane.xlu0 %467 }
 0x1ad   : > { %v485_v18 = vsub.f32 %v355_v38, %v468_v43 }
 0x1ae   : > { %503 = vst.msk [vmem:[%s930_s23 + $0x78] sm:$0xff] %vm487_vm15, %v486_v47 }
 0x1af   : > { %502 = vst.msk [vmem:[%s930_s23 + $0x70] sm:$0xff] %vm487_vm15, %v485_v18 }
 0x1b0 PF: > { %s12_s9 = sadd.s32 1, %s695_s9  }
 0x1b1   : > { %p9_p4 = scmp.ge.s32.totalorder %s12_s9, 4  }
 0x1b3   :  { %11 = sbr.rel (!%p9_p4) target bundleno = 1 (0x1), region = 59 }

</bundles_post_ra>
